<compile_context>
chip_gen: v7x
topology: tpu7x:2x2x1
jax: 0.10.0
libtpu: 0.0.40
codegen_flags: <defaults>
</compile_context>

<pallas_src>
import math

import jax
import jax.numpy as jnp
from jax.experimental import pallas as pl
from jax.experimental.pallas import tpu as pltpu


def _round_up(x, m):
    return ((x + m - 1) // m) * m


def _ffn_kernel(x_ref, w1_ref, b1_ref, w2_ref, b2_ref, o_ref):
    """Fused Linear -> GELU -> Linear on one (tm, dim) row tile."""
    x = x_ref[...]                                            # (tm, dim)

    # First linear (MXU), f32 accumulation; bias added in f32.
    h = jnp.dot(x, w1_ref[...], preferred_element_type=jnp.float32)
    h = h + b1_ref[...]                                       # (tm, hidden), f32

    # GELU in the MXU operand dtype (bf16 keeps the EUP/VPU work in bf16 on
    # v6e/v7x, where the transcendental slot binds for small dim).
    # TODO(synk): PyTorch nn.GELU() defaults to exact erf; the tanh
    # approximation (max abs err ~1e-3) is used for portable Mosaic lowering.
    h = jax.nn.gelu(h.astype(w2_ref.dtype), approximate=True)

    # Second linear (MXU), f32 accumulation; bias added in f32.
    y = jnp.dot(h, w2_ref[...], preferred_element_type=jnp.float32)
    y = y + b2_ref[...]                                       # (tm, dim), f32

    o_ref[...] = y.astype(o_ref.dtype)


def _vmem_estimate_bytes(tm, dim, hidden, x_item, w_item, out_item, weight_bufs):
    """Dtype- and buffer-count-accurate VMEM working-set estimate."""
    x_tile = 2 * tm * dim * x_item                   # x row tile (double-buffered)
    o_tile = 2 * tm * dim * out_item                 # out row tile (double-buffered)
    weights = weight_bufs * (dim * hidden + hidden * dim) * w_item
    biases = weight_bufs * (hidden + dim) * 4        # biases kept f32
    work = tm * hidden * 4 + tm * hidden * w_item + tm * dim * 4  # h(f32), h(cast), y(f32)
    return x_tile + o_tile + weights + biases + work


def pallas_feedforward(x, w1, b1, w2, b2, *, block_m=512, mxu_dtype=None,
                       single_buffer_weights=True):
    """y = GELU(x @ w1 + b1) @ w2 + b2 for x of shape (..., dim).

    mxu_dtype: optional dtype for the matmul operands (e.g. jnp.bfloat16).
    Accumulation is always f32, biases stay f32, output keeps x.dtype.
    """
    orig_shape = x.shape
    dim = x.shape[-1]
    hidden = w1.shape[-1]
    assert w1.shape == (dim, hidden)
    assert w2.shape == (hidden, dim)
    assert b1.shape == (hidden,)
    assert b2.shape == (dim,)

    out_dtype = x.dtype
    if mxu_dtype is not None:
        x = x.astype(mxu_dtype)
        w1 = w1.astype(mxu_dtype)
        w2 = w2.astype(mxu_dtype)
    b1_2 = b1.astype(jnp.float32).reshape(1, hidden)
    b2_2 = b2.astype(jnp.float32).reshape(1, dim)

    # Flatten leading (batch/token) dims into M; no padding / output slicing
    # (Pallas masks the ragged last block on writeback).
    M = int(math.prod(orig_shape[:-1])) if len(orig_shape) > 1 else 1
    x2 = x.reshape(M, dim)

    x_item = jnp.dtype(x2.dtype).itemsize
    w_item = jnp.dtype(w1.dtype).itemsize
    out_item = jnp.dtype(out_dtype).itemsize
    weight_bufs = 1 if single_buffer_weights else 2

    # VMEM budget from physical capacity (v5e/v6e 128 MiB, v7x 64 MiB per TC),
    # with headroom for Mosaic's internal scratch.
    try:
        phys_vmem = int(pltpu.get_tpu_info().vmem_capacity_bytes)
    except Exception:
        phys_vmem = 128 * 1024 * 1024
    vmem_ceiling = min(int(phys_vmem * 0.9), 112 * 1024 * 1024)

    # Row tile: multiple of 8 sublanes; large (default 512) for MXU fill and
    # grid-overhead amortization.
    tm = min(block_m, _round_up(M, 8))
    # Keep >= 2 grid steps so the "parallel" axis can use both v7x TensorCores.
    if M > 8 and pl.cdiv(M, tm) < 2:
        tm = _round_up(pl.cdiv(M, 2), 8)
    # Shrink the tile if the working set would blow the VMEM budget.
    while tm > 8 and _vmem_estimate_bytes(
            tm, dim, hidden, x_item, w_item, out_item, weight_bufs) > vmem_ceiling:
        tm = max(8, _round_up(tm // 2, 8))

    grid = (pl.cdiv(M, tm),)

    cost = pl.CostEstimate(
        flops=4 * M * dim * hidden,                 # two matmuls, 2 flop / MAC
        transcendentals=M * hidden,                 # tanh in GELU
        bytes_accessed=(M * dim * (x_item + out_item)
                        + 2 * dim * hidden * w_item + (hidden + dim) * 4),
    )

    def build_and_run(use_single_buffer):
        bufs = 1 if use_single_buffer else 2
        est = _vmem_estimate_bytes(tm, dim, hidden, x_item, w_item, out_item, bufs)
        vmem_limit = int(min(max(int(est * 1.5), 8 * 1024 * 1024), vmem_ceiling))
        w_kwargs = {"pipeline_mode": pl.Buffered(1)} if use_single_buffer else {}
        in_specs = [
            pl.BlockSpec((tm, dim), lambda i: (i, 0)),                   # x tile
            pl.BlockSpec((dim, hidden), lambda i: (0, 0), **w_kwargs),   # W1
            pl.BlockSpec((1, hidden), lambda i: (0, 0), **w_kwargs),     # b1
            pl.BlockSpec((hidden, dim), lambda i: (0, 0), **w_kwargs),   # W2
            pl.BlockSpec((1, dim), lambda i: (0, 0), **w_kwargs),        # b2
        ]
        return pl.pallas_call(
            _ffn_kernel,
            out_shape=jax.ShapeDtypeStruct((M, dim), out_dtype),
            grid=grid,
            in_specs=in_specs,
            out_specs=pl.BlockSpec((tm, dim), lambda i: (i, 0)),
            compiler_params=pltpu.CompilerParams(
                dimension_semantics=("parallel",),
                vmem_limit_bytes=vmem_limit,
            ),
            cost_estimate=cost,
        )(x2, w1, b1_2, w2, b2_2)

    if single_buffer_weights:
        try:
            out = build_and_run(True)
        except Exception:
            # Fallback: default (double-buffered) resident weights.
            out = build_and_run(False)
    else:
        out = build_and_run(False)

    return out.reshape(orig_shape)


if __name__ == "__main__":
    key = jax.random.PRNGKey(0)
    kx, k1, k2, k3, k4, kx2 = jax.random.split(key, 6)

    # Small shapes consistent with the ViT FeedForward: (batch, tokens, dim).
    B, N, dim, hidden = 2, 8, 32, 64
    x = jax.random.normal(kx, (B, N, dim), dtype=jnp.float32)
    w1 = 0.1 * jax.random.normal(k1, (dim, hidden), dtype=jnp.float32)
    b1 = 0.1 * jax.random.normal(k2, (hidden,), dtype=jnp.float32)
    w2 = 0.1 * jax.random.normal(k3, (hidden, dim), dtype=jnp.float32)
    b2 = 0.1 * jax.random.normal(k4, (dim,), dtype=jnp.float32)

    # Pure-JAX reference (dropout p=0.0 is identity).
    ref = jax.nn.gelu(x @ w1 + b1, approximate=True) @ w2 + b2

    # 1) f32 MXU path (tight tolerance vs. f32 reference).
    out = jax.block_until_ready(pallas_feedforward(x, w1, b1, w2, b2))
    assert out.shape == ref.shape, (out.shape, ref.shape)
    assert out.dtype == ref.dtype, (out.dtype, ref.dtype)
    assert bool(jnp.allclose(out, ref, atol=1e-5, rtol=1e-5)), (
        "Pallas FeedForward (f32) mismatch vs reference")

    # 2) bf16 MXU operands with f32 accumulation (loose tolerance).
    out_bf16 = jax.block_until_ready(
        pallas_feedforward(x, w1, b1, w2, b2, mxu_dtype=jnp.bfloat16))
    assert out_bf16.shape == ref.shape and out_bf16.dtype == ref.dtype
    assert bool(jnp.allclose(out_bf16, ref, atol=5e-2, rtol=5e-2)), (
        "Pallas FeedForward (bf16 MXU) mismatch vs reference")

    # 3) Ragged token count (M not a multiple of the row tile) to exercise the
    #    masked last-block writeback path (no jnp.pad / slice anymore).
    x_r = jax.random.normal(kx2, (3, 5, dim), dtype=jnp.float32)
    ref_r = jax.nn.gelu(x_r @ w1 + b1, approximate=True) @ w2 + b2
    out_r = jax.block_until_ready(pallas_feedforward(x_r, w1, b1, w2, b2))
    assert bool(jnp.allclose(out_r, ref_r, atol=1e-5, rtol=1e-5)), (
        "Pallas FeedForward (ragged M) mismatch vs reference")

    print("KERNEL_OK")
</pallas_src>

<mosaic_0001>
module attributes {stable_mosaic.version = 11 : i64} {
  func.func @_ffn_kernel(%arg0: i32, %arg1: memref<8x32xf32, #tpu.memory_space<vmem>>, %arg2: memref<32x64xf32, #tpu.memory_space<vmem>>, %arg3: memref<1x64xf32, #tpu.memory_space<vmem>>, %arg4: memref<64x32xf32, #tpu.memory_space<vmem>>, %arg5: memref<1x32xf32, #tpu.memory_space<vmem>>, %arg6: memref<8x32xf32, #tpu.memory_space<vmem>>) attributes {dimension_semantics = [#tpu.dimension_semantics<parallel>], iteration_bounds = array<i64: 2>, scalar_prefetch = 0 : i64, scratch_operands = 0 : i64, tpu.core_type = #tpu.core_type<tc>, window_params = [{transform_indices = @transform_0, window_bounds = array<i64: 8, 32>}, {pipeline_mode = #tpu.pipeline_mode<synchronous>, transform_indices = @transform_1, window_bounds = array<i64: 32, 64>}, {pipeline_mode = #tpu.pipeline_mode<synchronous>, transform_indices = @transform_2, window_bounds = array<i64: 1, 64>}, {pipeline_mode = #tpu.pipeline_mode<synchronous>, transform_indices = @transform_3, window_bounds = array<i64: 64, 32>}, {pipeline_mode = #tpu.pipeline_mode<synchronous>, transform_indices = @transform_4, window_bounds = array<i64: 1, 32>}, {transform_indices = @transform_5, window_bounds = array<i64: 8, 32>}]} {
    %c0 = arith.constant 0 : index
    %c0_0 = arith.constant 0 : index
    %0 = vector.load %arg1[%c0, %c0_0] : memref<8x32xf32, #tpu.memory_space<vmem>>, vector<8x32xf32>
    %c0_1 = arith.constant 0 : index
    %c0_2 = arith.constant 0 : index
    %1 = vector.load %arg2[%c0_1, %c0_2] : memref<32x64xf32, #tpu.memory_space<vmem>>, vector<32x64xf32>
    %cst = arith.constant dense<0.000000e+00> : vector<8x64xf32>
    %2 = tpu.matmul %0, %1, %cst {dimension_numbers = #tpu.dot_dimension_numbers<[1], [0], [0], [1], [0, 0, 1, 1], [], []>} : vector<8x32xf32>, vector<32x64xf32>, vector<8x64xf32> -> vector<8x64xf32>
    %c0_3 = arith.constant 0 : index
    %c0_4 = arith.constant 0 : index
    %3 = vector.load %arg3[%c0_3, %c0_4] : memref<1x64xf32, #tpu.memory_space<vmem>>, vector<1x64xf32>
    %4 = vector.broadcast %3 : vector<1x64xf32> to vector<8x64xf32>
    %5 = arith.addf %2, %4 : vector<8x64xf32>
    %6 = arith.mulf %5, %5 : vector<8x64xf32>
    %7 = arith.mulf %5, %6 : vector<8x64xf32>
    %cst_5 = arith.constant 4.471500e-02 : f32
    %8 = vector.broadcast %cst_5 : f32 to vector<8x64xf32>
    %9 = arith.mulf %8, %7 : vector<8x64xf32>
    %10 = arith.addf %5, %9 : vector<8x64xf32>
    %cst_6 = arith.constant 0.797884583 : f32
    %11 = vector.broadcast %cst_6 : f32 to vector<8x64xf32>
    %12 = arith.mulf %11, %10 : vector<8x64xf32>
    %13 = math.tanh %12 : vector<8x64xf32>
    %cst_7 = arith.constant 1.000000e+00 : f32
    %14 = vector.broadcast %cst_7 : f32 to vector<8x64xf32>
    %15 = arith.addf %14, %13 : vector<8x64xf32>
    %cst_8 = arith.constant 5.000000e-01 : f32
    %16 = vector.broadcast %cst_8 : f32 to vector<8x64xf32>
    %17 = arith.mulf %16, %15 : vector<8x64xf32>
    %18 = arith.mulf %5, %17 : vector<8x64xf32>
    %c0_9 = arith.constant 0 : index
    %c0_10 = arith.constant 0 : index
    %19 = vector.load %arg4[%c0_9, %c0_10] : memref<64x32xf32, #tpu.memory_space<vmem>>, vector<64x32xf32>
    %cst_11 = arith.constant dense<0.000000e+00> : vector<8x32xf32>
    %20 = tpu.matmul %18, %19, %cst_11 {dimension_numbers = #tpu.dot_dimension_numbers<[1], [0], [0], [1], [0, 0, 1, 1], [], []>} : vector<8x64xf32>, vector<64x32xf32>, vector<8x32xf32> -> vector<8x32xf32>
    %c0_12 = arith.constant 0 : index
    %c0_13 = arith.constant 0 : index
    %21 = vector.load %arg5[%c0_12, %c0_13] : memref<1x32xf32, #tpu.memory_space<vmem>>, vector<1x32xf32>
    %22 = vector.broadcast %21 : vector<1x32xf32> to vector<8x32xf32>
    %23 = arith.addf %20, %22 : vector<8x32xf32>
    %c0_14 = arith.constant 0 : index
    %c0_15 = arith.constant 0 : index
    %24 = vector.load %arg6[%c0_14, %c0_15] : memref<8x32xf32, #tpu.memory_space<vmem>>, vector<8x32xf32>
    tpu.vector_store %arg6[%c0_14, %c0_15], %23 {strides = array<i32>} : memref<8x32xf32, #tpu.memory_space<vmem>>, vector<8x32xf32>,
    return
  }
  func.func @transform_0(%arg0: i32) -> (i32, i32) {
    %c0_i32 = arith.constant 0 : i32
    %c0_i32_0 = arith.constant 0 : i32
    return %arg0, %c0_i32 : i32, i32
  }
  func.func @transform_1(%arg0: i32) -> (i32, i32) {
    %c0_i32 = arith.constant 0 : i32
    %c0_i32_0 = arith.constant 0 : i32
    %c0_i32_1 = arith.constant 0 : i32
    return %c0_i32, %c0_i32_0 : i32, i32
  }
  func.func @transform_2(%arg0: i32) -> (i32, i32) {
    %c0_i32 = arith.constant 0 : i32
    %c0_i32_0 = arith.constant 0 : i32
    %c0_i32_1 = arith.constant 0 : i32
    return %c0_i32, %c0_i32_0 : i32, i32
  }
  func.func @transform_3(%arg0: i32) -> (i32, i32) {
    %c0_i32 = arith.constant 0 : i32
    %c0_i32_0 = arith.constant 0 : i32
    %c0_i32_1 = arith.constant 0 : i32
    return %c0_i32, %c0_i32_0 : i32, i32
  }
  func.func @transform_4(%arg0: i32) -> (i32, i32) {
    %c0_i32 = arith.constant 0 : i32
    %c0_i32_0 = arith.constant 0 : i32
    %c0_i32_1 = arith.constant 0 : i32
    return %c0_i32, %c0_i32_0 : i32, i32
  }
  func.func @transform_5(%arg0: i32) -> (i32, i32) {
    %c0_i32 = arith.constant 0 : i32
    %c0_i32_0 = arith.constant 0 : i32
    return %arg0, %c0_i32 : i32, i32
  }
}

module attributes {stable_mosaic.version = 11 : i64} {
  func.func @_ffn_kernel(%arg0: i32, %arg1: memref<8x32xf32, #tpu.memory_space<vmem>>, %arg2: memref<32x64xf32, #tpu.memory_space<vmem>>, %arg3: memref<1x64xf32, #tpu.memory_space<vmem>>, %arg4: memref<64x32xf32, #tpu.memory_space<vmem>>, %arg5: memref<1x32xf32, #tpu.memory_space<vmem>>, %arg6: memref<8x32xf32, #tpu.memory_space<vmem>>) attributes {dimension_semantics = [#tpu.dimension_semantics<parallel>], iteration_bounds = array<i64: 2>, scalar_prefetch = 0 : i64, scratch_operands = 0 : i64, tpu.core_type = #tpu.core_type<tc>, window_params = [{transform_indices = @transform_0, window_bounds = array<i64: 8, 32>}, {pipeline_mode = #tpu.pipeline_mode<synchronous>, transform_indices = @transform_1, window_bounds = array<i64: 32, 64>}, {pipeline_mode = #tpu.pipeline_mode<synchronous>, transform_indices = @transform_2, window_bounds = array<i64: 1, 64>}, {pipeline_mode = #tpu.pipeline_mode<synchronous>, transform_indices = @transform_3, window_bounds = array<i64: 64, 32>}, {pipeline_mode = #tpu.pipeline_mode<synchronous>, transform_indices = @transform_4, window_bounds = array<i64: 1, 32>}, {transform_indices = @transform_5, window_bounds = array<i64: 8, 32>}]} {
    %c0 = arith.constant 0 : index
    %c0_0 = arith.constant 0 : index
    %0 = vector.load %arg1[%c0, %c0_0] : memref<8x32xf32, #tpu.memory_space<vmem>>, vector<8x32xf32>
    %c0_1 = arith.constant 0 : index
    %c0_2 = arith.constant 0 : index
    %1 = vector.load %arg2[%c0_1, %c0_2] : memref<32x64xf32, #tpu.memory_space<vmem>>, vector<32x64xf32>
    %cst = arith.constant dense<0.000000e+00> : vector<8x64xf32>
    %2 = tpu.matmul %0, %1, %cst {dimension_numbers = #tpu.dot_dimension_numbers<[1], [0], [0], [1], [0, 0, 1, 1], [], []>} : vector<8x32xf32>, vector<32x64xf32>, vector<8x64xf32> -> vector<8x64xf32>
    %c0_3 = arith.constant 0 : index
    %c0_4 = arith.constant 0 : index
    %3 = vector.load %arg3[%c0_3, %c0_4] : memref<1x64xf32, #tpu.memory_space<vmem>>, vector<1x64xf32>
    %4 = vector.broadcast %3 : vector<1x64xf32> to vector<8x64xf32>
    %5 = arith.addf %2, %4 : vector<8x64xf32>
    %6 = arith.mulf %5, %5 : vector<8x64xf32>
    %7 = arith.mulf %5, %6 : vector<8x64xf32>
    %cst_5 = arith.constant 4.471500e-02 : f32
    %8 = vector.broadcast %cst_5 : f32 to vector<8x64xf32>
    %9 = arith.mulf %8, %7 : vector<8x64xf32>
    %10 = arith.addf %5, %9 : vector<8x64xf32>
    %cst_6 = arith.constant 0.797884583 : f32
    %11 = vector.broadcast %cst_6 : f32 to vector<8x64xf32>
    %12 = arith.mulf %11, %10 : vector<8x64xf32>
    %13 = math.tanh %12 : vector<8x64xf32>
    %cst_7 = arith.constant 1.000000e+00 : f32
    %14 = vector.broadcast %cst_7 : f32 to vector<8x64xf32>
    %15 = arith.addf %14, %13 : vector<8x64xf32>
    %cst_8 = arith.constant 5.000000e-01 : f32
    %16 = vector.broadcast %cst_8 : f32 to vector<8x64xf32>
    %17 = arith.mulf %16, %15 : vector<8x64xf32>
    %18 = arith.mulf %5, %17 : vector<8x64xf32>
    %c0_9 = arith.constant 0 : index
    %c0_10 = arith.constant 0 : index
    %19 = vector.load %arg4[%c0_9, %c0_10] : memref<64x32xf32, #tpu.memory_space<vmem>>, vector<64x32xf32>
    %cst_11 = arith.constant dense<0.000000e+00> : vector<8x32xf32>
    %20 = tpu.matmul %18, %19, %cst_11 {dimension_numbers = #tpu.dot_dimension_numbers<[1], [0], [0], [1], [0, 0, 1, 1], [], []>} : vector<8x64xf32>, vector<64x32xf32>, vector<8x32xf32> -> vector<8x32xf32>
    %c0_12 = arith.constant 0 : index
    %c0_13 = arith.constant 0 : index
    %21 = vector.load %arg5[%c0_12, %c0_13] : memref<1x32xf32, #tpu.memory_space<vmem>>, vector<1x32xf32>
    %22 = vector.broadcast %21 : vector<1x32xf32> to vector<8x32xf32>
    %23 = arith.addf %20, %22 : vector<8x32xf32>
    %c0_14 = arith.constant 0 : index
    %c0_15 = arith.constant 0 : index
    %24 = vector.load %arg6[%c0_14, %c0_15] : memref<8x32xf32, #tpu.memory_space<vmem>>, vector<8x32xf32>
    tpu.vector_store %arg6[%c0_14, %c0_15], %23 {strides = array<i32>} : memref<8x32xf32, #tpu.memory_space<vmem>>, vector<8x32xf32>,
    return
  }
  func.func @transform_0(%arg0: i32) -> (i32, i32) {
    %c0_i32 = arith.constant 0 : i32
    %c0_i32_0 = arith.constant 0 : i32
    return %arg0, %c0_i32 : i32, i32
  }
  func.func @transform_1(%arg0: i32) -> (i32, i32) {
    %c0_i32 = arith.constant 0 : i32
    %c0_i32_0 = arith.constant 0 : i32
    %c0_i32_1 = arith.constant 0 : i32
    return %c0_i32, %c0_i32_0 : i32, i32
  }
  func.func @transform_2(%arg0: i32) -> (i32, i32) {
    %c0_i32 = arith.constant 0 : i32
    %c0_i32_0 = arith.constant 0 : i32
    %c0_i32_1 = arith.constant 0 : i32
    return %c0_i32, %c0_i32_0 : i32, i32
  }
  func.func @transform_3(%arg0: i32) -> (i32, i32) {
    %c0_i32 = arith.constant 0 : i32
    %c0_i32_0 = arith.constant 0 : i32
    %c0_i32_1 = arith.constant 0 : i32
    return %c0_i32, %c0_i32_0 : i32, i32
  }
  func.func @transform_4(%arg0: i32) -> (i32, i32) {
    %c0_i32 = arith.constant 0 : i32
    %c0_i32_0 = arith.constant 0 : i32
    %c0_i32_1 = arith.constant 0 : i32
    return %c0_i32, %c0_i32_0 : i32, i32
  }
  func.func @transform_5(%arg0: i32) -> (i32, i32) {
    %c0_i32 = arith.constant 0 : i32
    %c0_i32_0 = arith.constant 0 : i32
    return %arg0, %c0_i32 : i32, i32
  }
}

</mosaic_0001>

<bundles_post_ra>
// kernel: tpu_custom_call.1
= control target key start
LH: loop header
LB: loop body
LE: loop exit
PB: predicated region body
PF: predicated region fallthrough
CT: control target
= control target key end

     0   :  { %10 = vsyncpa [#allocation3], 0  ;;  %s840_s0 = inlined_call_operand.vmem [shape: f32[16,32], index: 0, kind: input, shape index: {}]   ;;  %s841_s1 = inlined_call_operand.vmem [shape: f32[32,64], index: 1, kind: input, shape index: {}]   ;;  %s842_s2 = inlined_call_operand.vmem [shape: f32[1,64], index: 2, kind: input, shape index: {}]   ;;  %s843_s3 = inlined_call_operand.vmem [shape: f32[64,32], index: 3, kind: input, shape index: {}]   ;;  %s844_s4 = inlined_call_operand.vmem [shape: f32[1,32], index: 4, kind: input, shape index: {}]   ;;  %s845_s5 = inlined_call_operand.hbm [shape: f32[16,32], index: 5, kind: output, shape index: {}]  }
   0x1   :  { %12 = vsyncpa [#allocation3 + $0x1], 0  ;;  %s696_s18 = smov 0   ;;  %s698_s19 = smov 0  }
   0x2   :  { %s700_s20 = smov 0   ;;  %s702_s21 = smov 0  }
   0x3 LB: > { %s717_s22 = sadd.s32 4294967295, %s660_s21   ;;  %s478_s23 = sadd.s32 4294967294, %s660_s21   ;;  %s660_s21 = sphi %s702_s21, %s851_s21   ;;  %s656_s20 = sphi %s700_s20, %s850_s20   ;;  %s652_s19 = sphi %s698_s19, %s849_s19   ;;  %s648_s18 = sphi %s696_s18, %s848_s18  }
   0x4   : > { %s721_s24 = sadd.s32 1, %s660_s21   ;;  %s135_s25 = sadd.s32 1, %s656_s20 }
   0x5   : > { %s132_s26 = ssub.s32 %s660_s21, %s721_s24  ;;  %p145_p0 = scmp.ne.s32.totalorder %s656_s20, %s652_s19 }
   0x6   : > { %p133_p1 = scmp.eq.s32.totalorder %s132_s26, 0  ;;  %p146_p2 = scmp.eq.s32.totalorder %s717_s22, 1 }
   0x7   : > { %p151_p3 = scmp.ne.s32.totalorder %s652_s19, %s648_s18  ;;  %p152_p4 = scmp.eq.s32.totalorder %s478_s23, 1 }
   0x8   : > { %s732_s27 = scalar_select %p133_p1, %s656_s20, %s135_s25  }
   0x9   : > { %p734_p5 = por %p146_p2, %p145_p0  ;;  %p738_p6 = por %p152_p4, %p151_p3 }
   0xa   : > { %p481_p7 = scmp.ge.s32.totalorder %s660_s21, 1  ;;  %p189_p8 = scmp.lt.s32.totalorder %s660_s21, 3 }
   0xc   : > { %p190_p9 = pnand %p481_p7, %p189_p8 }
   0xd   : > { %v221_v0 = vld [vmem:[%s841_s1] sm:$0xff] (!%p190_p9)  ;;  %v222_v1 = vld [vmem:[%s841_s1 + $0x8] sm:$0xff] (!%p190_p9)  ;;  %v223_v2 = vld [vmem:[%s841_s1 + $0x10] sm:$0xff] (!%p190_p9)  ;;  %v662_v3 = vmov (!%p190_p9), 0.0|0.0   ;;  %vm663_vm0 = vmmov (!%p190_p9), 0   ;;  %v664_v6 = vmov (!%p190_p9), 0.0  }
   0xe   : > { %193 = sbr.rel (%p190_p9) target bundleno = 495 (0x1ef), region = 40  ;;  %536 = vmatprep.subr.bf16.mxu0 (!%p190_p9), %v662_v3  ;;  %v537_v4 = vpack.c.bf16 (!%p190_p9), %v222_v1, %v221_v0  ;;  %v224_v5 = vld [vmem:[%s841_s1 + $0x18] sm:$0xff] (!%p190_p9)  ;;  %514 = vmatprep.mubr.msk.f32.mxu0 (!%p190_p9), %vm663_vm0, %v664_v6  ;;  %p216_p10 = scmp.lt.s32.totalorder (!%p190_p9), %s717_s22, 1  ;;  %vm232_vm1 = vcmask (!%p190_p9), 261120   ;;  %v315_v9 = vld [vmem:[%s843_s3] sm:$0xff] (!%p190_p9)  ;;  %v316_v10 = vld [vmem:[%s843_s3 + $0x8] sm:$0xff] (!%p190_p9) }
   0xf   : > { %542 = vmatprep.subr.bf16.mxu1 (!%p190_p9), %v662_v3  ;;  %533 = vmatprep.mubr.msk.f32.mxu1 (!%p190_p9), %vm663_vm0, %v664_v6  ;;  %v540_v7 = vpack.c.bf16 (!%p190_p9), %v224_v5, %v223_v2  ;;  %v543_v11 = vpack.c.bf16 (!%p190_p9), %v316_v10, %v315_v9  ;;  %v317_v12 = vld [vmem:[%s843_s3 + $0x10] sm:$0xff] (!%p190_p9)  ;;  %v318_v13 = vld [vmem:[%s843_s3 + $0x18] sm:$0xff] (!%p190_p9)  ;;  %v319_v15 = vld [vmem:[%s843_s3 + $0x20] sm:$0xff] (!%p190_p9)  ;;  %vm330_vm2 = vcmask (!%p190_p9), 523264   ;;  %s213_s26 = sand.u32 (!%p190_p9), 1, %s652_s19   ;;  %s489_s8 = sshll.u32 (!%p190_p9), %s717_s22, 7 }
  0x10   : > { %538 = vmatpush3.bf16.msra.mxu0 (!%p190_p9), %v537_v4  ;;  %v546_v14 = vpack.c.bf16 (!%p190_p9), %v318_v13, %v317_v12  ;;  %v320_v16 = vld [vmem:[%s843_s3 + $0x28] sm:$0xff] (!%p190_p9)  ;;  %v321_v18 = vld [vmem:[%s843_s3 + $0x30] sm:$0xff] (!%p190_p9)  ;;  %v322_v19 = vld [vmem:[%s843_s3 + $0x38] sm:$0xff] (!%p190_p9)  ;;  %s482_s30 = sshll.u32 (!%p190_p9), %s213_s26, 3 }
  0x11   : > { %539 = vmatprep.subr.bf16.mxu0 (!%p190_p9), %v662_v3  ;;  %544 = vmatpush3.bf16.msra.mxu1 (!%p190_p9), %v543_v11  ;;  %v549_v17 = vpack.c.bf16 (!%p190_p9), %v320_v16, %v319_v15  ;;  %v552_v20 = vpack.c.bf16 (!%p190_p9), %v322_v19, %v321_v18  ;;  %v484_v21 = vld [vmem:[%s842_s2] ss:$0 sm:$0xff] (!%p190_p9)  ;;  %s215_s9 = scalar_lea.vmem (!%p190_p9), [#allocation2], %s482_s30 }
  0x12   : > { %545 = vmatprep.subr.bf16.mxu1 (!%p190_p9), %v662_v3  ;;  %v486_v34 = vld [vmem:[%s844_s4] ss:$0 sm:$0xff] (!%p190_p9)  ;;  %s419_s10 = sshll.u32 (!%p190_p9), %s215_s9, 4  ;;  %s799_s10 = int_to_ptr.vmem [resolvable:$true] %s419_s10 }
  0x13   : > { %s598_s15 = scalar_lea.vmem (!%p190_p9), %s799_s10, 128 }
  0x14   : > { %541 = vmatpush3.bf16.msra.mxu0 (!%p190_p9), %v540_v7  ;;  %p599_p11 = scmp.ne.s32.totalorder (!%p190_p9), %s799_s10, %s598_s15 }
  0x15   : > { %s217_s13 = scalar_select %p216_p10, %s717_s22, 1  ;;  %547 = vmatpush3.bf16.msra.mxu1 %v546_v14 }
  0x16   : > { %548 = vmatprep.subr.bf16.mxu1 %v662_v3  ;;  %p600_p12 = pnand %p599_p11, %p734_p5  ;;  %s665_s22 = smov [#allocation2]  }
  0x17   : > { %s483_s14 = sshll.u32 %s217_s13, 3  ;;  %s797_s13 = scalar_lea.hbm %s845_s5, %s489_s8 }
  0x18   : > { %s219_s17 = scalar_lea.vmem %s840_s0, %s483_s14  ;;  %s406_s14 = scalar_lea.sflag [#allocation3], %s213_s26 }
  0x19   : > { %v220_v8 = vld [vmem:[%s219_s17] sm:$0xff]  ;;  %550 = vmatpush3.bf16.msra.mxu1 %v549_v17  ;;  %p601_p13 = pneg %p600_p12  ;;  %s602_s16 = sshll.u32 %s665_s22, 4  ;;  %s603_s16 = int_to_ptr.vmem [resolvable:$false] %s602_s16 }
  0x1a   : > { %515 = vmatmul.mubr.msk.f32.vlgmr.msra.gmra.mrb[0].mxu0 %vm232_vm1, %v220_v8  ;;  %551 = vmatprep.subr.bf16.mxu1 %v662_v3  ;;  %s604_s17 = scalar_lea.vmem %s603_s16, 256  ;;  %p605_p0 = scmp.lt.s32.totalorder %s799_s10, %s603_s16 }
  0x1b   : > { %p606_p1 = scmp.lt.s32.totalorder %s604_s17, %s598_s15 }
  0x1d   : > { %553 = vmatpush3.bf16.msra.mxu1 %v552_v20  ;;  %p607_p2 = por %p606_p1, %p605_p0 }
  0x1f   : > { %p608_p3 = pnand %p607_p2, %p601_p13 }
  0xed   : > { %v302_v22 = vpop.f32.mrb[0].mxu0 }
  0xee   : > { %v303_v23 = vadd.f32 %v484_v21, %v302_v22  ;;  %v516_v24 = vpop.f32.mrb[1].mxu0 }
  0xf0   : > { %v306_v25 = vmul.f32 %v303_v23, %v303_v23 }
  0xf2   : > { %v307_v26 = vmul.f32 %v306_v25, %v303_v23 }
  0xf4   : > { %v308_v27 = vmul.f32 0.044715, %v307_v26 }
  0xf6   : > { %v309_v28 = vadd.f32 %v308_v27, %v303_v23 }
  0xf8   : > { %v310_v29 = vmul.f32 0.7978846, %v309_v28 }
  0xfa   : > { %596 = vtanh.f32 %v310_v29 }
 0x104   : > { %v597_v30 = vpop.eup %596 }
 0x105   : > { %v312_v31 = vadd.f32 1.0, %v597_v30 }
 0x107   : > { %v313_v32 = vmul.f32 0.5, %v312_v31 }
 0x109   : > { %v314_v33 = vmul.f32 %v313_v32, %v303_v23 }
 0x10b   : > { %534 = vmatmul.mubr.msk.f32.vlgmr.msra.gmra.mrb[0].mxu1 %vm330_vm2, %v314_v33 }
 0x1de   : > { %v400_v35 = vpop.f32.mrb[0].mxu1 }
 0x1df   : > { %v401_v36 = vadd.f32 %v486_v34, %v400_v35  ;;  %v535_v37 = vpop.f32.mrb[1].mxu1 }
 0x1e1   : > { %404 = vst.msk [vmem:[%s215_s9] sm:$0xff] %vm232_vm1, %v401_v36 }
 0x1e2   : > { %611 = shalt.err (!%p608_p3)
}
 0x1e3   : > { %s612_s23 = scalar_lea.hbm %s797_s13, 128  ;;  %s616_s30 = scalar_lea.hbm %s845_s5, 256 }
 0x1e4   : > { %p613_p4 = scmp.ne.s32.totalorder %s797_s13, %s612_s23  ;;  %p617_p9 = scmp.lt.u32.totalorder %s797_s13, %s845_s5 }
 0x1e5   : > { %p618_p10 = scmp.lt.u32.totalorder %s616_s30, %s612_s23  ;;  %p620_p12 = scmp.lt.u32.totalorder %s612_s23, %s797_s13 }
 0x1e6   : > { %p614_p7 = pnand %p613_p4, %p734_p5 }
 0x1e7   : > { %p619_p11 = por %p618_p10, %p617_p9 }
 0x1e8   : > { %p615_p8 = pneg %p614_p7 }
 0x1e9   : > { %p621_p13 = por %p620_p12, %p619_p11 }
 0x1eb   : > { %p622_p0 = pnand %p621_p13, %p615_p8 }
 0x1ed   : > { %625 = shalt.err (!%p622_p0)
}
 0x1ee   : > { %554 = dma.vmem_to_hbm [thread:$0]  (%p734_p5), %s799_s10, 128, %s797_s13, %s406_s14  }
 0x1ef PF: > { %p560_p1 = scmp.ge.s32.totalorder %s660_s21, 2  ;;  %s431_s8 = sand.u32 1, %s648_s18  }
 0x1f0   : > { %s432_s9 = scalar_lea.sflag [#allocation3], %s431_s8 }
 0x1f1   : > { %p557_p2 = pnand %p560_p1, %p738_p6 }
 0x1f3   : > { %643 = dma.done.wait (!%p557_p2), %s432_s9, 128  }
 0x1f4   : > { %645 = vsyncadd (!%p557_p2), %s432_s9, 4294967168  ;;  %p15_p3 = scmp.ge.s32.totalorder %s721_s24, 4   ;;  %s848_s18 = smov %s652_s19 }
 0x1f5   : > { %s849_s19 = smov %s656_s20  ;;  %s850_s20 = smov %s732_s27 }
 0x1f6   : > { %s851_s21 = smov %s721_s24  ;;  %17 = sbr.rel (!%p15_p3) target bundleno = 3 (0x3), region = 75 }
 0x1fd   :  { %437 = vsyncpa [#allocation3], 1 }
 0x1fe   :  { %439 = vsyncpa [#allocation3 + $0x1], 1 }

// kernel: tpu_custom_call.1
= control target key start
LH: loop header
LB: loop body
LE: loop exit
PB: predicated region body
PF: predicated region fallthrough
CT: control target
= control target key end

     0   :  { %10 = vsyncpa [#allocation3], 0  ;;  %s840_s0 = inlined_call_operand.vmem [shape: f32[16,32], index: 0, kind: input, shape index: {}]   ;;  %s841_s1 = inlined_call_operand.vmem [shape: f32[32,64], index: 1, kind: input, shape index: {}]   ;;  %s842_s2 = inlined_call_operand.vmem [shape: f32[1,64], index: 2, kind: input, shape index: {}]   ;;  %s843_s3 = inlined_call_operand.vmem [shape: f32[64,32], index: 3, kind: input, shape index: {}]   ;;  %s844_s4 = inlined_call_operand.vmem [shape: f32[1,32], index: 4, kind: input, shape index: {}]   ;;  %s845_s5 = inlined_call_operand.hbm [shape: f32[16,32], index: 5, kind: output, shape index: {}]  }
   0x1   :  { %12 = vsyncpa [#allocation3 + $0x1], 0  ;;  %s696_s18 = smov 0   ;;  %s698_s19 = smov 0  }
   0x2   :  { %s700_s20 = smov 0   ;;  %s702_s21 = smov 0  }
   0x3 LB: > { %s717_s22 = sadd.s32 4294967295, %s660_s21   ;;  %s478_s23 = sadd.s32 4294967294, %s660_s21   ;;  %s660_s21 = sphi %s702_s21, %s851_s21   ;;  %s656_s20 = sphi %s700_s20, %s850_s20   ;;  %s652_s19 = sphi %s698_s19, %s849_s19   ;;  %s648_s18 = sphi %s696_s18, %s848_s18  }
   0x4   : > { %s721_s24 = sadd.s32 1, %s660_s21   ;;  %s135_s25 = sadd.s32 1, %s656_s20 }
   0x5   : > { %s132_s26 = ssub.s32 %s660_s21, %s721_s24  ;;  %p145_p0 = scmp.ne.s32.totalorder %s656_s20, %s652_s19 }
   0x6   : > { %p133_p1 = scmp.eq.s32.totalorder %s132_s26, 0  ;;  %p146_p2 = scmp.eq.s32.totalorder %s717_s22, 1 }
   0x7   : > { %p151_p3 = scmp.ne.s32.totalorder %s652_s19, %s648_s18  ;;  %p152_p4 = scmp.eq.s32.totalorder %s478_s23, 1 }
   0x8   : > { %s732_s27 = scalar_select %p133_p1, %s656_s20, %s135_s25  }
   0x9   : > { %p734_p5 = por %p146_p2, %p145_p0  ;;  %p738_p6 = por %p152_p4, %p151_p3 }
   0xa   : > { %p481_p7 = scmp.ge.s32.totalorder %s660_s21, 1  ;;  %p189_p8 = scmp.lt.s32.totalorder %s660_s21, 3 }
   0xc   : > { %p190_p9 = pnand %p481_p7, %p189_p8 }
   0xd   : > { %v221_v0 = vld [vmem:[%s841_s1] sm:$0xff] (!%p190_p9)  ;;  %v222_v1 = vld [vmem:[%s841_s1 + $0x8] sm:$0xff] (!%p190_p9)  ;;  %v223_v2 = vld [vmem:[%s841_s1 + $0x10] sm:$0xff] (!%p190_p9)  ;;  %v662_v3 = vmov (!%p190_p9), 0.0|0.0   ;;  %vm663_vm0 = vmmov (!%p190_p9), 0   ;;  %v664_v6 = vmov (!%p190_p9), 0.0  }
   0xe   : > { %193 = sbr.rel (%p190_p9) target bundleno = 495 (0x1ef), region = 40  ;;  %536 = vmatprep.subr.bf16.mxu0 (!%p190_p9), %v662_v3  ;;  %v537_v4 = vpack.c.bf16 (!%p190_p9), %v222_v1, %v221_v0  ;;  %v224_v5 = vld [vmem:[%s841_s1 + $0x18] sm:$0xff] (!%p190_p9)  ;;  %514 = vmatprep.mubr.msk.f32.mxu0 (!%p190_p9), %vm663_vm0, %v664_v6  ;;  %p216_p10 = scmp.lt.s32.totalorder (!%p190_p9), %s717_s22, 1  ;;  %vm232_vm1 = vcmask (!%p190_p9), 261120   ;;  %v315_v9 = vld [vmem:[%s843_s3] sm:$0xff] (!%p190_p9)  ;;  %v316_v10 = vld [vmem:[%s843_s3 + $0x8] sm:$0xff] (!%p190_p9) }
   0xf   : > { %542 = vmatprep.subr.bf16.mxu1 (!%p190_p9), %v662_v3  ;;  %533 = vmatprep.mubr.msk.f32.mxu1 (!%p190_p9), %vm663_vm0, %v664_v6  ;;  %v540_v7 = vpack.c.bf16 (!%p190_p9), %v224_v5, %v223_v2  ;;  %v543_v11 = vpack.c.bf16 (!%p190_p9), %v316_v10, %v315_v9  ;;  %v317_v12 = vld [vmem:[%s843_s3 + $0x10] sm:$0xff] (!%p190_p9)  ;;  %v318_v13 = vld [vmem:[%s843_s3 + $0x18] sm:$0xff] (!%p190_p9)  ;;  %v319_v15 = vld [vmem:[%s843_s3 + $0x20] sm:$0xff] (!%p190_p9)  ;;  %vm330_vm2 = vcmask (!%p190_p9), 523264   ;;  %s213_s26 = sand.u32 (!%p190_p9), 1, %s652_s19   ;;  %s489_s8 = sshll.u32 (!%p190_p9), %s717_s22, 7 }
  0x10   : > { %538 = vmatpush3.bf16.msra.mxu0 (!%p190_p9), %v537_v4  ;;  %v546_v14 = vpack.c.bf16 (!%p190_p9), %v318_v13, %v317_v12  ;;  %v320_v16 = vld [vmem:[%s843_s3 + $0x28] sm:$0xff] (!%p190_p9)  ;;  %v321_v18 = vld [vmem:[%s843_s3 + $0x30] sm:$0xff] (!%p190_p9)  ;;  %v322_v19 = vld [vmem:[%s843_s3 + $0x38] sm:$0xff] (!%p190_p9)  ;;  %s482_s30 = sshll.u32 (!%p190_p9), %s213_s26, 3 }
  0x11   : > { %539 = vmatprep.subr.bf16.mxu0 (!%p190_p9), %v662_v3  ;;  %544 = vmatpush3.bf16.msra.mxu1 (!%p190_p9), %v543_v11  ;;  %v549_v17 = vpack.c.bf16 (!%p190_p9), %v320_v16, %v319_v15  ;;  %v552_v20 = vpack.c.bf16 (!%p190_p9), %v322_v19, %v321_v18  ;;  %v484_v21 = vld [vmem:[%s842_s2] ss:$0 sm:$0xff] (!%p190_p9)  ;;  %s215_s9 = scalar_lea.vmem (!%p190_p9), [#allocation2], %s482_s30 }
  0x12   : > { %545 = vmatprep.subr.bf16.mxu1 (!%p190_p9), %v662_v3  ;;  %v486_v34 = vld [vmem:[%s844_s4] ss:$0 sm:$0xff] (!%p190_p9)  ;;  %s419_s10 = sshll.u32 (!%p190_p9), %s215_s9, 4  ;;  %s799_s10 = int_to_ptr.vmem [resolvable:$true] %s419_s10 }
  0x13   : > { %s598_s15 = scalar_lea.vmem (!%p190_p9), %s799_s10, 128 }
  0x14   : > { %541 = vmatpush3.bf16.msra.mxu0 (!%p190_p9), %v540_v7  ;;  %p599_p11 = scmp.ne.s32.totalorder (!%p190_p9), %s799_s10, %s598_s15 }
  0x15   : > { %s217_s13 = scalar_select %p216_p10, %s717_s22, 1  ;;  %547 = vmatpush3.bf16.msra.mxu1 %v546_v14 }
  0x16   : > { %548 = vmatprep.subr.bf16.mxu1 %v662_v3  ;;  %p600_p12 = pnand %p599_p11, %p734_p5  ;;  %s665_s22 = smov [#allocation2]  }
  0x17   : > { %s483_s14 = sshll.u32 %s217_s13, 3  ;;  %s797_s13 = scalar_lea.hbm %s845_s5, %s489_s8 }
  0x18   : > { %s219_s17 = scalar_lea.vmem %s840_s0, %s483_s14  ;;  %s406_s14 = scalar_lea.sflag [#allocation3], %s213_s26 }
  0x19   : > { %v220_v8 = vld [vmem:[%s219_s17] sm:$0xff]  ;;  %550 = vmatpush3.bf16.msra.mxu1 %v549_v17  ;;  %p601_p13 = pneg %p600_p12  ;;  %s602_s16 = sshll.u32 %s665_s22, 4  ;;  %s603_s16 = int_to_ptr.vmem [resolvable:$false] %s602_s16 }
  0x1a   : > { %515 = vmatmul.mubr.msk.f32.vlgmr.msra.gmra.mrb[0].mxu0 %vm232_vm1, %v220_v8  ;;  %551 = vmatprep.subr.bf16.mxu1 %v662_v3  ;;  %s604_s17 = scalar_lea.vmem %s603_s16, 256  ;;  %p605_p0 = scmp.lt.s32.totalorder %s799_s10, %s603_s16 }
  0x1b   : > { %p606_p1 = scmp.lt.s32.totalorder %s604_s17, %s598_s15 }
  0x1d   : > { %553 = vmatpush3.bf16.msra.mxu1 %v552_v20  ;;  %p607_p2 = por %p606_p1, %p605_p0 }
  0x1f   : > { %p608_p3 = pnand %p607_p2, %p601_p13 }
  0xed   : > { %v302_v22 = vpop.f32.mrb[0].mxu0 }
  0xee   : > { %v303_v23 = vadd.f32 %v484_v21, %v302_v22  ;;  %v516_v24 = vpop.f32.mrb[1].mxu0 }
  0xf0   : > { %v306_v25 = vmul.f32 %v303_v23, %v303_v23 }
  0xf2   : > { %v307_v26 = vmul.f32 %v306_v25, %v303_v23 }
  0xf4   : > { %v308_v27 = vmul.f32 0.044715, %v307_v26 }
  0xf6   : > { %v309_v28 = vadd.f32 %v308_v27, %v303_v23 }
  0xf8   : > { %v310_v29 = vmul.f32 0.7978846, %v309_v28 }
  0xfa   : > { %596 = vtanh.f32 %v310_v29 }
 0x104   : > { %v597_v30 = vpop.eup %596 }
 0x105   : > { %v312_v31 = vadd.f32 1.0, %v597_v30 }
 0x107   : > { %v313_v32 = vmul.f32 0.5, %v312_v31 }
 0x109   : > { %v314_v33 = vmul.f32 %v313_v32, %v303_v23 }
 0x10b   : > { %534 = vmatmul.mubr.msk.f32.vlgmr.msra.gmra.mrb[0].mxu1 %vm330_vm2, %v314_v33 }
 0x1de   : > { %v400_v35 = vpop.f32.mrb[0].mxu1 }
 0x1df   : > { %v401_v36 = vadd.f32 %v486_v34, %v400_v35  ;;  %v535_v37 = vpop.f32.mrb[1].mxu1 }
 0x1e1   : > { %404 = vst.msk [vmem:[%s215_s9] sm:$0xff] %vm232_vm1, %v401_v36 }
 0x1e2   : > { %611 = shalt.err (!%p608_p3)
}
 0x1e3   : > { %s612_s23 = scalar_lea.hbm %s797_s13, 128  ;;  %s616_s30 = scalar_lea.hbm %s845_s5, 256 }
 0x1e4   : > { %p613_p4 = scmp.ne.s32.totalorder %s797_s13, %s612_s23  ;;  %p617_p9 = scmp.lt.u32.totalorder %s797_s13, %s845_s5 }
 0x1e5   : > { %p618_p10 = scmp.lt.u32.totalorder %s616_s30, %s612_s23  ;;  %p620_p12 = scmp.lt.u32.totalorder %s612_s23, %s797_s13 }
 0x1e6   : > { %p614_p7 = pnand %p613_p4, %p734_p5 }
 0x1e7   : > { %p619_p11 = por %p618_p10, %p617_p9 }
 0x1e8   : > { %p615_p8 = pneg %p614_p7 }
 0x1e9   : > { %p621_p13 = por %p620_p12, %p619_p11 }
 0x1eb   : > { %p622_p0 = pnand %p621_p13, %p615_p8 }
 0x1ed   : > { %625 = shalt.err (!%p622_p0)
}
 0x1ee   : > { %554 = dma.vmem_to_hbm [thread:$0]  (%p734_p5), %s799_s10, 128, %s797_s13, %s406_s14  }
 0x1ef PF: > { %p560_p1 = scmp.ge.s32.totalorder %s660_s21, 2  ;;  %s431_s8 = sand.u32 1, %s648_s18  }
 0x1f0   : > { %s432_s9 = scalar_lea.sflag [#allocation3], %s431_s8 }
 0x1f1   : > { %p557_p2 = pnand %p560_p1, %p738_p6 }
 0x1f3   : > { %643 = dma.done.wait (!%p557_p2), %s432_s9, 128  }
 0x1f4   : > { %645 = vsyncadd (!%p557_p2), %s432_s9, 4294967168  ;;  %p15_p3 = scmp.ge.s32.totalorder %s721_s24, 4   ;;  %s848_s18 = smov %s652_s19 }
 0x1f5   : > { %s849_s19 = smov %s656_s20  ;;  %s850_s20 = smov %s732_s27 }
 0x1f6   : > { %s851_s21 = smov %s721_s24  ;;  %17 = sbr.rel (!%p15_p3) target bundleno = 3 (0x3), region = 75 }
 0x1fd   :  { %437 = vsyncpa [#allocation3], 1 }
 0x1fe   :  { %439 = vsyncpa [#allocation3 + $0x1], 1 }

</bundles_post_ra>
